<compile_context>
chip_gen: v6e
topology: v6e:2x2x1
jax: 0.10.0
libtpu: 0.0.40
codegen_flags: <defaults>
</compile_context>

<pallas_src>
import math
import functools

import jax
import jax.numpy as jnp
from jax import lax
from jax.experimental import pallas as pl
from jax.experimental.pallas import tpu as pltpu

# ------------------------- model config (small, consistent with the module) ---------------
DIM = 64           # args.dim
N_HEADS = 4        # args.n_heads
N_KV_HEADS = 2     # args.n_kv_heads  (GQA: n_rep = 2)
HEAD_DIM = DIM // N_HEADS           # 16
N_REP = N_HEADS // N_KV_HEADS       # 2
HIDDEN_DIM = 128   # args.hidden_dim
NORM_EPS = 1e-5    # args.norm_eps
ROPE_THETA = 10000.0
MAX_SEQ = 16       # args.max_context_size (KV cache length, power of two)
BATCH = 2          # == args.max_batch_size
SEQ = 8
NEG_INF = -1e30

Q_WIDTH = N_HEADS * HEAD_DIM        # 64
KV_WIDTH = N_KV_HEADS * HEAD_DIM    # 32
CACHE_WIDTH = 2 * KV_WIDTH          # 64  (k | v packed, lane-dense)

# fused QKV(+RoPE-rotated copies) weight column layout, padded to 256 lanes
COL_Q = 0
COL_QR = Q_WIDTH                    # 64
COL_K = 2 * Q_WIDTH                 # 128
COL_KR = COL_K + KV_WIDTH           # 160
COL_V = COL_KR + KV_WIDTH           # 192
QKV_EXT_WIDTH = COL_V + KV_WIDTH    # 224
QKV_PAD_WIDTH = 256                 # lane-dense matmul output


# ------------------------------------- fused Pallas kernel --------------------------------
def _fused_block_kernel(pos_ref,
                        x_ref, ln1_ref, ln2_ref, wqkv_ref, wo_ref, wgu_ref, wd_ref,
                        cos_ref, sin_ref, bmask_ref, kv_in_ref,
                        out_ref, kv_out_ref,
                        kv_scr,
                        *, seq, eps):
    f32 = jnp.float32
    bf16 = jnp.bfloat16
    start = pos_ref[0]                                   # contiguous positions start..start+seq-1

    x = x_ref[...].astype(f32)                           # (S, D)

    # ---- RMSNorm (input), f32 elementwise ----
    ms = jnp.mean(x * x, axis=-1, keepdims=True)
    xn = x * lax.rsqrt(ms + eps) * ln1_ref[...]

    # ---- fused QKV (+ pre-rotated copies) projection: bf16 operands, f32 accumulate,
    #      256-wide lane-dense output ----
    qkv = jnp.dot(xn.astype(bf16), wqkv_ref[...], preferred_element_type=f32)   # (S, 256)
    q_lin = qkv[:, COL_Q:COL_Q + Q_WIDTH]
    q_rot = qkv[:, COL_QR:COL_QR + Q_WIDTH]
    k_lin = qkv[:, COL_K:COL_K + KV_WIDTH]
    k_rot = qkv[:, COL_KR:COL_KR + KV_WIDTH]
    v_new = qkv[:, COL_V:COL_V + KV_WIDTH]

    # ---- RoPE: purely elementwise (pair-swap folded into the weight; scale folded into q) ----
    cos = cos_ref[pl.ds(start, seq), :]                  # (S, Q_WIDTH)
    sin = sin_ref[pl.ds(start, seq), :]
    q = q_lin * cos + q_rot * sin                        # already scaled by 1/sqrt(hd)
    k_new = k_lin * cos[:, :KV_WIDTH] + k_rot * sin[:, :KV_WIDTH]

    # ---- KV-cache update: copy old block once, dynamic-slice write of the new rows ----
    kv_scr[...] = kv_in_ref[0].astype(f32)
    kv_rows = jnp.concatenate([k_new, v_new], axis=1).astype(bf16).astype(f32)  # bf16 round-trip
    kv_scr[pl.ds(start, seq), :] = kv_rows
    kv_all = kv_scr[...]                                 # (T, 2*KV_WIDTH), bf16-exact values
    kv_out_ref[0] = kv_all.astype(kv_out_ref.dtype)

    keys = kv_all[:, :KV_WIDTH]                          # (T, KV_WIDTH)
    vals = kv_all[:, KV_WIDTH:]

    # ---- GQA attention over ALL heads at once on lane-dense (S, H*T) tiles ----
    # Replicate kv heads into the q-head layout, then place block-diagonally so a single
    # matmul produces every head's scores, and a single PV matmul produces the output
    # already in the concatenated (S, H*hd) layout.
    keys_rep = jnp.concatenate(
        [keys[:, (h // N_REP) * HEAD_DIM:(h // N_REP + 1) * HEAD_DIM] for h in range(N_HEADS)],
        axis=1)                                          # (T, H*hd)
    vals_rep = jnp.concatenate(
        [vals[:, (h // N_REP) * HEAD_DIM:(h // N_REP + 1) * HEAD_DIM] for h in range(N_HEADS)],
        axis=1)
    bmask = bmask_ref[...]                               # (H*T, H*hd) block-diagonal 0/1
    kt = (jnp.concatenate([keys_rep] * N_HEADS, axis=0) * bmask).astype(bf16)   # (H*T, H*hd)
    vp = (jnp.concatenate([vals_rep] * N_HEADS, axis=0) * bmask).astype(bf16)

    # scores[s, h*T + t] = q_h[s] . k_{g(h)}[t] * scale   (one NT matmul for all heads)
    scores = lax.dot_general(q.astype(bf16), kt, (((1,), (1,)), ((), ())),
                             preferred_element_type=f32)                         # (S, H*T)

    # causal mask over cache slots, built in-kernel (MAX_SEQ is a power of two -> use &)
    t_idx = lax.broadcasted_iota(jnp.int32, (seq, N_HEADS * MAX_SEQ), 1) & (MAX_SEQ - 1)
    s_idx = lax.broadcasted_iota(jnp.int32, (seq, N_HEADS * MAX_SEQ), 0)
    scores = jnp.where(t_idx <= start + s_idx, scores, NEG_INF)

    # softmax: a per-row max (constant within each head segment) is a valid stable shift;
    # per-head denominators come from one matmul with the block mask.
    m = jnp.max(scores, axis=-1, keepdims=True)
    p = jnp.exp(scores - m).astype(bf16)                 # masked entries are exactly 0
    l_hd = jnp.dot(p, bmask.astype(bf16), preferred_element_type=f32)   # (S, H*hd) per-head sums
    l_hd = jnp.maximum(l_hd, 1e-30)                      # guard against a fully-underflowed head
    o_un = jnp.dot(p, vp, preferred_element_type=f32)    # (S, H*hd), concatenated-head layout
    attn = o_un * pl.reciprocal(l_hd, approx=True)

    # ---- output projection + residual ----
    h1 = x + jnp.dot(attn.astype(bf16), wo_ref[...], preferred_element_type=f32)

    # ---- RMSNorm (post-attention) ----
    ms2 = jnp.mean(h1 * h1, axis=-1, keepdims=True)
    hn = h1 * lax.rsqrt(ms2 + eps) * ln2_ref[...]

    # ---- fused SwiGLU: one 256-wide gate+up matmul, SiLU(gate)*up, then down ----
    gu = jnp.dot(hn.astype(bf16), wgu_ref[...], preferred_element_type=f32)     # (S, 2*HIDDEN)
    gate = gu[:, :HIDDEN_DIM]
    up = gu[:, HIDDEN_DIM:]
    act = (gate * jax.nn.sigmoid(gate) * up).astype(bf16)
    mlp = jnp.dot(act, wd_ref[...], preferred_element_type=f32)

    out_ref[...] = (h1 + mlp).astype(out_ref.dtype)


# ------------------------------------- wrapper --------------------------------------------
@jax.jit
def transformer_block(params, x, input_pos, kv_cache):
    b, s, d = x.shape
    x2d = x.reshape(b * s, d)
    kernel = functools.partial(_fused_block_kernel, seq=s, eps=NORM_EPS)

    grid_spec = pltpu.PrefetchScalarGridSpec(
        num_scalar_prefetch=1,
        grid=(b,),
        in_specs=[
            pl.BlockSpec((s, d), lambda i, pos: (i, 0)),                       # x rows, batch i
            pl.BlockSpec((1, d), lambda i, pos: (0, 0)),                       # input RMSNorm w
            pl.BlockSpec((1, d), lambda i, pos: (0, 0)),                       # post RMSNorm w
            pl.BlockSpec((d, QKV_PAD_WIDTH), lambda i, pos: (0, 0)),           # fused QKV+rot w
            pl.BlockSpec((Q_WIDTH, d), lambda i, pos: (0, 0)),                 # Wo
            pl.BlockSpec((d, 2 * HIDDEN_DIM), lambda i, pos: (0, 0)),          # fused gate|up
            pl.BlockSpec((HIDDEN_DIM, d), lambda i, pos: (0, 0)),              # down
            pl.BlockSpec((MAX_SEQ, Q_WIDTH), lambda i, pos: (0, 0)),           # cos table
            pl.BlockSpec((MAX_SEQ, Q_WIDTH), lambda i, pos: (0, 0)),           # sin table
            pl.BlockSpec((N_HEADS * MAX_SEQ, Q_WIDTH), lambda i, pos: (0, 0)),  # block-diag mask
            pl.BlockSpec((1, MAX_SEQ, CACHE_WIDTH), lambda i, pos: (i, 0, 0)),  # packed kv cache
        ],
        out_specs=(
            pl.BlockSpec((s, d), lambda i, pos: (i, 0)),
            pl.BlockSpec((1, MAX_SEQ, CACHE_WIDTH), lambda i, pos: (i, 0, 0)),
        ),
        scratch_shapes=[pltpu.VMEM((MAX_SEQ, CACHE_WIDTH), jnp.float32)],
    )

    out2d, kv_new = pl.pallas_call(
        kernel,
        grid_spec=grid_spec,
        out_shape=(
            jax.ShapeDtypeStruct((b * s, d), x.dtype),
            jax.ShapeDtypeStruct((b, MAX_SEQ, CACHE_WIDTH), kv_cache.dtype),
        ),
        # kv cache updated in place; flat input index (incl. the scalar-prefetch operand)
        input_output_aliases={11: 1},
        compiler_params=pltpu.CompilerParams(dimension_semantics=("parallel",)),
    )(input_pos, x2d,
      params["input_ln_w"], params["post_ln_w"],
      params["wqkv_ext"], params["wo_b16"], params["wgu_b16"], params["wd_b16"],
      params["rope_cos"], params["rope_sin"], params["attn_block_mask"],
      kv_cache)

    return out2d.reshape(b, s, d), kv_new


# ------------------------------- model-constant construction (init-time) ------------------
def make_pair_swap(width):
    # (x @ R)[2i] = -x[2i+1], (x @ R)[2i+1] = x[2i]
    r = jnp.arange(width)[:, None]
    c = jnp.arange(width)[None, :]
    return (((c == r + 1) & (r % 2 == 0)).astype(jnp.float32)
            - ((c == r - 1) & (r % 2 == 1)).astype(jnp.float32))


def make_rope_tables():
    inv = 1.0 / (ROPE_THETA ** (jnp.arange(0, HEAD_DIM, 2, dtype=jnp.float32) / HEAD_DIM))
    t = jnp.arange(MAX_SEQ, dtype=jnp.float32)
    ang = jnp.outer(t, inv)                              # (T, hd/2)
    cos, sin = jnp.cos(ang), jnp.sin(ang)
    cos_q = jnp.tile(jnp.repeat(cos, 2, axis=-1), (1, N_HEADS))   # (T, Q_WIDTH)
    sin_q = jnp.tile(jnp.repeat(sin, 2, axis=-1), (1, N_HEADS))
    return cos, sin, cos_q, sin_q


def make_block_mask():
    blk_r = jnp.arange(N_HEADS * MAX_SEQ)[:, None] // MAX_SEQ
    blk_c = jnp.arange(Q_WIDTH)[None, :] // HEAD_DIM
    return (blk_r == blk_c).astype(jnp.float32)          # (H*T, H*hd)


# ------------------------------------- pure-JAX reference ---------------------------------
def apply_rope(x, cos, sin):
    b, s, h, hd = x.shape
    xr = x.astype(jnp.float32).reshape(b, s, h, hd // 2, 2)
    xe, xo = xr[..., 0], xr[..., 1]
    cc = cos[None, :, None, :]
    si = sin[None, :, None, :]
    oe = xe * cc - xo * si
    oo = xe * si + xo * cc
    return jnp.stack([oe, oo], axis=-1).reshape(b, s, h, hd).astype(x.dtype)


def repeat_kv(x, n_rep):
    b, t, n_kv, hd = x.shape
    if n_rep == 1:
        return x
    return jnp.broadcast_to(
        x[:, :, :, None, :], (b, t, n_kv, n_rep, hd)).reshape(b, t, n_kv * n_rep, hd)


def reference_block(params, x, input_pos, cos, sin, mask, k_cache, v_cache):
    b, s, d = x.shape

    def rms(x2, w):
        xf = x2.astype(jnp.float32)
        return w * (xf * lax.rsqrt(jnp.mean(xf * xf, -1, keepdims=True) + NORM_EPS))

    x2d = x.reshape(b * s, d)
    xn = rms(x2d, params["input_ln_w"])
    xq = (xn @ params["wq_t"]).reshape(b, s, N_HEADS, HEAD_DIM)
    xk = (xn @ params["wk_t"]).reshape(b, s, N_KV_HEADS, HEAD_DIM)
    xv = (xn @ params["wv_t"]).reshape(b, s, N_KV_HEADS, HEAD_DIM)
    cos_p, sin_p = cos[input_pos], sin[input_pos]
    xq = apply_rope(xq, cos_p, sin_p)
    xk = apply_rope(xk, cos_p, sin_p)
    k_cache = k_cache.at[:, input_pos].set(xk.astype(k_cache.dtype))
    v_cache = v_cache.at[:, input_pos].set(xv.astype(v_cache.dtype))
    keys = jnp.transpose(repeat_kv(k_cache.astype(jnp.float32), N_REP), (0, 2, 1, 3))
    values = jnp.transpose(repeat_kv(v_cache.astype(jnp.float32), N_REP), (0, 2, 1, 3))
    q = jnp.transpose(xq, (0, 2, 1, 3))
    scores = jnp.einsum("bhsd,bhtd->bhst", q, keys) / math.sqrt(HEAD_DIM) + mask
    p = jax.nn.softmax(scores, axis=-1)
    attn = jnp.einsum("bhst,bhtd->bhsd", p, values)
    attn = jnp.transpose(attn, (0, 2, 1, 3)).reshape(b * s, N_HEADS * HEAD_DIM)
    h = x + (attn @ params["wo_t"]).reshape(b, s, d)
    hn = rms(h.reshape(b * s, d), params["post_ln_w"])
    gate = hn @ params["wg_t"]
    up = hn @ params["wu_t"]
    mlp = ((gate * jax.nn.sigmoid(gate)) * up) @ params["wd_t"]
    return h + mlp.reshape(b, s, d), k_cache, v_cache


# ------------------------------------- main ------------------------------------------------
if __name__ == "__main__":
    key = jax.random.PRNGKey(0)
    ks = jax.random.split(key, 8)

    def init_w(k, in_f, out_f):  # stored pre-transposed: (in_features, out_features)
        return 0.02 * jax.random.normal(k, (in_f, out_f), jnp.float32)

    wq_t = init_w(ks[0], DIM, Q_WIDTH)
    wk_t = init_w(ks[1], DIM, KV_WIDTH)
    wv_t = init_w(ks[2], DIM, KV_WIDTH)
    wo_t = init_w(ks[3], Q_WIDTH, DIM)
    wg_t = init_w(ks[4], DIM, HIDDEN_DIM)
    wu_t = init_w(ks[5], DIM, HIDDEN_DIM)
    wd_t = init_w(ks[6], HIDDEN_DIM, DIM)

    # ---- init-time (per-model, not per-step) fused / extended weights and tables ----
    rot = make_pair_swap(Q_WIDTH)
    rot_k = rot[:KV_WIDTH, :KV_WIDTH]
    scale = 1.0 / math.sqrt(HEAD_DIM)                 # folded into the q weight columns
    cos_half, sin_half, cos_q, sin_q = make_rope_tables()
    wqkv_ext = jnp.concatenate(
        [wq_t * scale, (wq_t @ rot) * scale, wk_t, wk_t @ rot_k, wv_t,
         jnp.zeros((DIM, QKV_PAD_WIDTH - QKV_EXT_WIDTH), jnp.float32)],
        axis=1).astype(jnp.bfloat16)                  # (64, 256) lane-dense

    params = {
        "input_ln_w": jnp.ones((1, DIM), jnp.float32),   # RMSNorm init = ones
        "post_ln_w": jnp.ones((1, DIM), jnp.float32),
        # f32 originals (reference)
        "wq_t": wq_t, "wk_t": wk_t, "wv_t": wv_t, "wo_t": wo_t,
        "wg_t": wg_t, "wu_t": wu_t, "wd_t": wd_t,
        # bf16 fused weights (kernel)
        "wqkv_ext": wqkv_ext,
        "wo_b16": wo_t.astype(jnp.bfloat16),
        "wgu_b16": jnp.concatenate([wg_t, wu_t], axis=1).astype(jnp.bfloat16),   # (64, 256)
        "wd_b16": wd_t.astype(jnp.bfloat16),
        # model constants (kernel)
        "rope_cos": cos_q, "rope_sin": sin_q,
        "attn_block_mask": make_block_mask(),
    }

    x = 0.5 * jax.random.normal(ks[7], (BATCH, SEQ, DIM), jnp.float32)
    input_pos = jnp.arange(SEQ, dtype=jnp.int32)         # prefill positions 0..S-1
    kv_cache = jnp.zeros((BATCH, MAX_SEQ, CACHE_WIDTH), jnp.bfloat16)

    out, kv_new = transformer_block(params, x, input_pos, kv_cache)
    out = jax.block_until_ready(out)

    # ---- pure-JAX reference (f32 weights, complex-pair RoPE, separate bf16 caches) ----
    jidx = jnp.arange(MAX_SEQ)
    mask2d = jnp.where(jidx[None, :] <= input_pos[:, None], 0.0, NEG_INF).astype(jnp.float32)
    k_cache0 = jnp.zeros((BATCH, MAX_SEQ, N_KV_HEADS, HEAD_DIM), jnp.bfloat16)
    v_cache0 = jnp.zeros_like(k_cache0)
    ref, k_ref, v_ref = reference_block(
        params, x, input_pos, cos_half, sin_half, mask2d[None, None], k_cache0, v_cache0)
    ref = jax.block_until_ready(ref)

    assert out.shape == (BATCH, SEQ, DIM)
    assert kv_new.shape == (BATCH, MAX_SEQ, CACHE_WIDTH)
    assert bool(jnp.all(jnp.isfinite(out)))
    assert bool(jnp.allclose(out, ref, atol=5e-2, rtol=5e-2)), \
        float(jnp.max(jnp.abs(out - ref)))
    k_new = kv_new[:, :, :KV_WIDTH].reshape(BATCH, MAX_SEQ, N_KV_HEADS, HEAD_DIM)
    v_new = kv_new[:, :, KV_WIDTH:].reshape(BATCH, MAX_SEQ, N_KV_HEADS, HEAD_DIM)
    assert bool(jnp.allclose(k_new.astype(jnp.float32), k_ref.astype(jnp.float32), atol=2e-2))
    assert bool(jnp.allclose(v_new.astype(jnp.float32), v_ref.astype(jnp.float32), atol=2e-2))

    print("KERNEL_OK")
</pallas_src>

<mosaic_0001>
module attributes {stable_mosaic.version = 11 : i64} {
  func.func @_fused_block_kernel(%arg0: i32, %arg1: memref<8xi32, #tpu.memory_space<smem>>, %arg2: memref<8x64xf32, #tpu.memory_space<vmem>>, %arg3: memref<1x64xf32, #tpu.memory_space<vmem>>, %arg4: memref<1x64xf32, #tpu.memory_space<vmem>>, %arg5: memref<64x256xbf16, #tpu.memory_space<vmem>>, %arg6: memref<64x64xbf16, #tpu.memory_space<vmem>>, %arg7: memref<64x256xbf16, #tpu.memory_space<vmem>>, %arg8: memref<128x64xbf16, #tpu.memory_space<vmem>>, %arg9: memref<16x64xf32, #tpu.memory_space<vmem>>, %arg10: memref<16x64xf32, #tpu.memory_space<vmem>>, %arg11: memref<64x64xf32, #tpu.memory_space<vmem>>, %arg12: memref<1x16x64xbf16, #tpu.memory_space<vmem>>, %arg13: memref<8x64xf32, #tpu.memory_space<vmem>>, %arg14: memref<1x16x64xbf16, #tpu.memory_space<vmem>>, %arg15: memref<16x64xf32, #tpu.memory_space<vmem>>) attributes {dimension_semantics = [#tpu.dimension_semantics<parallel>], iteration_bounds = array<i64: 2>, scalar_prefetch = 1 : i64, scratch_operands = 1 : i64, tpu.core_type = #tpu.core_type<tc>, window_params = [{transform_indices = @transform_0, window_bounds = array<i64: 8, 64>}, {pipeline_mode = #tpu.pipeline_mode<synchronous>, transform_indices = @transform_1, window_bounds = array<i64: 1, 64>}, {pipeline_mode = #tpu.pipeline_mode<synchronous>, transform_indices = @transform_2, window_bounds = array<i64: 1, 64>}, {pipeline_mode = #tpu.pipeline_mode<synchronous>, transform_indices = @transform_3, window_bounds = array<i64: 64, 256>}, {pipeline_mode = #tpu.pipeline_mode<synchronous>, transform_indices = @transform_4, window_bounds = array<i64: 64, 64>}, {pipeline_mode = #tpu.pipeline_mode<synchronous>, transform_indices = @transform_5, window_bounds = array<i64: 64, 256>}, {pipeline_mode = #tpu.pipeline_mode<synchronous>, transform_indices = @transform_6, window_bounds = array<i64: 128, 64>}, {pipeline_mode = #tpu.pipeline_mode<synchronous>, transform_indices = @transform_7, window_bounds = array<i64: 16, 64>}, {pipeline_mode = #tpu.pipeline_mode<synchronous>, transform_indices = @transform_8, window_bounds = array<i64: 16, 64>}, {pipeline_mode = #tpu.pipeline_mode<synchronous>, transform_indices = @transform_9, window_bounds = array<i64: 64, 64>}, {transform_indices = @transform_10, window_bounds = array<i64: 1, 16, 64>}, {transform_indices = @transform_11, window_bounds = array<i64: 8, 64>}, {transform_indices = @transform_12, window_bounds = array<i64: 1, 16, 64>}]} {
    %c0 = arith.constant 0 : index
    %0 = memref.load %arg1[%c0] : memref<8xi32, #tpu.memory_space<smem>>
    %c0_0 = arith.constant 0 : index
    %c0_1 = arith.constant 0 : index
    %1 = vector.load %arg2[%c0_0, %c0_1] : memref<8x64xf32, #tpu.memory_space<vmem>>, vector<8x64xf32>
    %2 = arith.mulf %1, %1 : vector<8x64xf32>
    %cst = arith.constant dense<0.000000e+00> : vector<8xf32>
    %3 = vector.multi_reduction <add>, %2, %cst [1] : vector<8x64xf32> to vector<8xf32>
    %4 = vector.shape_cast %3 : vector<8xf32> to vector<8x1xf32>
    %cst_2 = arith.constant 6.400000e+01 : f32
    %5 = vector.broadcast %cst_2 : f32 to vector<8x1xf32>
    %6 = arith.divf %4, %5 : vector<8x1xf32>
    %cst_3 = arith.constant 9.99999974E-6 : f32
    %7 = vector.broadcast %cst_3 : f32 to vector<8x1xf32>
    %8 = arith.addf %6, %7 : vector<8x1xf32>
    %9 = math.rsqrt %8 : vector<8x1xf32>
    %10 = vector.broadcast %9 : vector<8x1xf32> to vector<8x64xf32>
    %11 = arith.mulf %1, %10 : vector<8x64xf32>
    %c0_4 = arith.constant 0 : index
    %c0_5 = arith.constant 0 : index
    %12 = vector.load %arg3[%c0_4, %c0_5] : memref<1x64xf32, #tpu.memory_space<vmem>>, vector<1x64xf32>
    %13 = vector.broadcast %12 : vector<1x64xf32> to vector<8x64xf32>
    %14 = arith.mulf %11, %13 : vector<8x64xf32>
    %15 = arith.truncf %14 : vector<8x64xf32> to vector<8x64xbf16>
    %c0_6 = arith.constant 0 : index
    %c0_7 = arith.constant 0 : index
    %16 = vector.load %arg5[%c0_6, %c0_7] : memref<64x256xbf16, #tpu.memory_space<vmem>>, vector<64x256xbf16>
    %cst_8 = arith.constant dense<0.000000e+00> : vector<8x256xf32>
    %17 = tpu.matmul %15, %16, %cst_8 {dimension_numbers = #tpu.dot_dimension_numbers<[1], [0], [0], [1], [0, 0, 1, 1], [], []>} : vector<8x64xbf16>, vector<64x256xbf16>, vector<8x256xf32> -> vector<8x256xf32>
    %18 = vector.extract_strided_slice %17 {offsets = [0, 0], sizes = [8, 64], strides = [1, 1]} : vector<8x256xf32> to vector<8x64xf32>
    %19 = vector.extract_strided_slice %17 {offsets = [0, 64], sizes = [8, 64], strides = [1, 1]} : vector<8x256xf32> to vector<8x64xf32>
    %20 = vector.extract_strided_slice %17 {offsets = [0, 128], sizes = [8, 32], strides = [1, 1]} : vector<8x256xf32> to vector<8x32xf32>
    %21 = vector.extract_strided_slice %17 {offsets = [0, 160], sizes = [8, 32], strides = [1, 1]} : vector<8x256xf32> to vector<8x32xf32>
    %22 = vector.extract_strided_slice %17 {offsets = [0, 192], sizes = [8, 32], strides = [1, 1]} : vector<8x256xf32> to vector<8x32xf32>
    %23 = arith.index_cast %0 : i32 to index
    %c0_9 = arith.constant 0 : index
    %24 = vector.load %arg9[%23, %c0_9] : memref<16x64xf32, #tpu.memory_space<vmem>>, vector<8x64xf32>
    %25 = arith.index_cast %0 : i32 to index
    %c0_10 = arith.constant 0 : index
    %26 = vector.load %arg10[%25, %c0_10] : memref<16x64xf32, #tpu.memory_space<vmem>>, vector<8x64xf32>
    %27 = arith.mulf %18, %24 : vector<8x64xf32>
    %28 = arith.mulf %19, %26 : vector<8x64xf32>
    %29 = arith.addf %27, %28 : vector<8x64xf32>
    %30 = vector.extract_strided_slice %24 {offsets = [0, 0], sizes = [8, 32], strides = [1, 1]} : vector<8x64xf32> to vector<8x32xf32>
    %31 = arith.mulf %20, %30 : vector<8x32xf32>
    %32 = vector.extract_strided_slice %26 {offsets = [0, 0], sizes = [8, 32], strides = [1, 1]} : vector<8x64xf32> to vector<8x32xf32>
    %33 = arith.mulf %21, %32 : vector<8x32xf32>
    %34 = arith.addf %31, %33 : vector<8x32xf32>
    %c0_11 = arith.constant 0 : index
    %c0_12 = arith.constant 0 : index
    %c0_13 = arith.constant 0 : index
    %35 = vector.load %arg12[%c0_11, %c0_12, %c0_13] : memref<1x16x64xbf16, #tpu.memory_space<vmem>>, vector<1x16x64xbf16>
    %36 = vector.shape_cast %35 : vector<1x16x64xbf16> to vector<16x64xbf16>
    %37 = arith.extf %36 : vector<16x64xbf16> to vector<16x64xf32>
    %c0_14 = arith.constant 0 : index
    %c0_15 = arith.constant 0 : index
    %38 = vector.load %arg15[%c0_14, %c0_15] : memref<16x64xf32, #tpu.memory_space<vmem>>, vector<16x64xf32>
    tpu.vector_store %arg15[%c0_14, %c0_15], %37 {strides = array<i32>} : memref<16x64xf32, #tpu.memory_space<vmem>>, vector<16x64xf32>,
    %39 = tpu.concatenate %34, %22 in 1 : vector<8x32xf32>, vector<8x32xf32> -> vector<8x64xf32>
    %40 = arith.truncf %39 : vector<8x64xf32> to vector<8x64xbf16>
    %41 = arith.extf %40 : vector<8x64xbf16> to vector<8x64xf32>
    %42 = arith.index_cast %0 : i32 to index
    %c0_16 = arith.constant 0 : index
    %43 = vector.load %arg15[%42, %c0_16] : memref<16x64xf32, #tpu.memory_space<vmem>>, vector<8x64xf32>
    tpu.vector_store %arg15[%42, %c0_16], %41 {strides = array<i32>} : memref<16x64xf32, #tpu.memory_space<vmem>>, vector<8x64xf32>,
    %c0_17 = arith.constant 0 : index
    %c0_18 = arith.constant 0 : index
    %44 = vector.load %arg15[%c0_17, %c0_18] : memref<16x64xf32, #tpu.memory_space<vmem>>, vector<16x64xf32>
    %45 = arith.truncf %44 : vector<16x64xf32> to vector<16x64xbf16>
    %c0_19 = arith.constant 0 : index
    %c0_20 = arith.constant 0 : index
    %c0_21 = arith.constant 0 : index
    %46 = vector.load %arg14[%c0_19, %c0_20, %c0_21] : memref<1x16x64xbf16, #tpu.memory_space<vmem>>, vector<1x16x64xbf16>
    %47 = vector.shape_cast %46 : vector<1x16x64xbf16> to vector<16x64xbf16>
    %48 = vector.shape_cast %45 : vector<16x64xbf16> to vector<1x16x64xbf16>
    tpu.vector_store %arg14[%c0_19, %c0_20, %c0_21], %48 {strides = array<i32>} : memref<1x16x64xbf16, #tpu.memory_space<vmem>>, vector<1x16x64xbf16>,
    %49 = vector.extract_strided_slice %44 {offsets = [0, 0], sizes = [16, 32], strides = [1, 1]} : vector<16x64xf32> to vector<16x32xf32>
    %50 = vector.extract_strided_slice %44 {offsets = [0, 32], sizes = [16, 32], strides = [1, 1]} : vector<16x64xf32> to vector<16x32xf32>
    %51 = vector.extract_strided_slice %49 {offsets = [0, 0], sizes = [16, 16], strides = [1, 1]} : vector<16x32xf32> to vector<16x16xf32>
    %52 = vector.extract_strided_slice %49 {offsets = [0, 0], sizes = [16, 16], strides = [1, 1]} : vector<16x32xf32> to vector<16x16xf32>
    %53 = vector.extract_strided_slice %49 {offsets = [0, 16], sizes = [16, 16], strides = [1, 1]} : vector<16x32xf32> to vector<16x16xf32>
    %54 = vector.extract_strided_slice %49 {offsets = [0, 16], sizes = [16, 16], strides = [1, 1]} : vector<16x32xf32> to vector<16x16xf32>
    %55 = tpu.concatenate %51, %52, %53, %54 in 1 : vector<16x16xf32>, vector<16x16xf32>, vector<16x16xf32>, vector<16x16xf32> -> vector<16x64xf32>
    %56 = vector.extract_strided_slice %50 {offsets = [0, 0], sizes = [16, 16], strides = [1, 1]} : vector<16x32xf32> to vector<16x16xf32>
    %57 = vector.extract_strided_slice %50 {offsets = [0, 0], sizes = [16, 16], strides = [1, 1]} : vector<16x32xf32> to vector<16x16xf32>
    %58 = vector.extract_strided_slice %50 {offsets = [0, 16], sizes = [16, 16], strides = [1, 1]} : vector<16x32xf32> to vector<16x16xf32>
    %59 = vector.extract_strided_slice %50 {offsets = [0, 16], sizes = [16, 16], strides = [1, 1]} : vector<16x32xf32> to vector<16x16xf32>
    %60 = tpu.concatenate %56, %57, %58, %59 in 1 : vector<16x16xf32>, vector<16x16xf32>, vector<16x16xf32>, vector<16x16xf32> -> vector<16x64xf32>
    %c0_22 = arith.constant 0 : index
    %c0_23 = arith.constant 0 : index
    %61 = vector.load %arg11[%c0_22, %c0_23] : memref<64x64xf32, #tpu.memory_space<vmem>>, vector<64x64xf32>
    %62 = tpu.concatenate %55, %55, %55, %55 in 0 : vector<16x64xf32>, vector<16x64xf32>, vector<16x64xf32>, vector<16x64xf32> -> vector<64x64xf32>
    %63 = arith.mulf %62, %61 : vector<64x64xf32>
    %64 = arith.truncf %63 : vector<64x64xf32> to vector<64x64xbf16>
    %65 = tpu.concatenate %60, %60, %60, %60 in 0 : vector<16x64xf32>, vector<16x64xf32>, vector<16x64xf32>, vector<16x64xf32> -> vector<64x64xf32>
    %66 = arith.mulf %65, %61 : vector<64x64xf32>
    %67 = arith.truncf %66 : vector<64x64xf32> to vector<64x64xbf16>
    %68 = arith.truncf %29 : vector<8x64xf32> to vector<8x64xbf16>
    %cst_24 = arith.constant dense<0.000000e+00> : vector<8x64xf32>
    %69 = tpu.matmul %68, %64, %cst_24 {dimension_numbers = #tpu.dot_dimension_numbers<[1], [1], [0], [0], [0, 0, 1, 0], [], []>} : vector<8x64xbf16>, vector<64x64xbf16>, vector<8x64xf32> -> vector<8x64xf32>
    %70 = tpu.iota {dimensions = array<i32: 1>} : vector<8x64xi32>
    %c15_i32 = arith.constant 15 : i32
    %71 = vector.broadcast %c15_i32 : i32 to vector<8x64xi32>
    %72 = arith.andi %70, %71 : vector<8x64xi32>
    %73 = tpu.iota {dimensions = array<i32: 0>} : vector<8x64xi32>
    %74 = vector.broadcast %0 : i32 to vector<8x64xi32>
    %75 = arith.addi %74, %73 : vector<8x64xi32>
    %76 = arith.cmpi sle, %72, %75 : vector<8x64xi32>
    %cst_25 = arith.constant -1.000000e+30 : f32
    %77 = vector.broadcast %cst_25 : f32 to vector<8x64xf32>
    %78 = arith.select %76, %69, %77 : vector<8x64xi1>, vector<8x64xf32>
    %cst_26 = arith.constant dense<0xFF800000> : vector<8xf32>
    %79 = vector.multi_reduction <maximumf>, %78, %cst_26 [1] : vector<8x64xf32> to vector<8xf32>
    %80 = vector.shape_cast %79 : vector<8xf32> to vector<8x1xf32>
    %81 = vector.broadcast %80 : vector<8x1xf32> to vector<8x64xf32>
    %82 = arith.subf %78, %81 : vector<8x64xf32>
    %83 = math.exp %82 : vector<8x64xf32>
    %84 = arith.truncf %83 : vector<8x64xf32> to vector<8x64xbf16>
    %85 = arith.truncf %61 : vector<64x64xf32> to vector<64x64xbf16>
    %cst_27 = arith.constant dense<0.000000e+00> : vector<8x64xf32>
    %86 = tpu.matmul %84, %85, %cst_27 {dimension_numbers = #tpu.dot_dimension_numbers<[1], [0], [0], [1], [0, 0, 1, 1], [], []>} : vector<8x64xbf16>, vector<64x64xbf16>, vector<8x64xf32> -> vector<8x64xf32>
    %cst_28 = arith.constant 1.000000e-30 : f32
    %87 = vector.broadcast %cst_28 : f32 to vector<8x64xf32>
    %88 = arith.maximumf %86, %87 : vector<8x64xf32>
    %cst_29 = arith.constant dense<0.000000e+00> : vector<8x64xf32>
    %89 = tpu.matmul %84, %67, %cst_29 {dimension_numbers = #tpu.dot_dimension_numbers<[1], [0], [0], [1], [0, 0, 1, 1], [], []>} : vector<8x64xbf16>, vector<64x64xbf16>, vector<8x64xf32> -> vector<8x64xf32>
    %90 = tpu.reciprocal %88 {approx = true} : vector<8x64xf32> -> vector<8x64xf32>
    %91 = arith.mulf %89, %90 : vector<8x64xf32>
    %92 = arith.truncf %91 : vector<8x64xf32> to vector<8x64xbf16>
    %c0_30 = arith.constant 0 : index
    %c0_31 = arith.constant 0 : index
    %93 = vector.load %arg6[%c0_30, %c0_31] : memref<64x64xbf16, #tpu.memory_space<vmem>>, vector<64x64xbf16>
    %cst_32 = arith.constant dense<0.000000e+00> : vector<8x64xf32>
    %94 = tpu.matmul %92, %93, %cst_32 {dimension_numbers = #tpu.dot_dimension_numbers<[1], [0], [0], [1], [0, 0, 1, 1], [], []>} : vector<8x64xbf16>, vector<64x64xbf16>, vector<8x64xf32> -> vector<8x64xf32>
    %95 = arith.addf %1, %94 : vector<8x64xf32>
    %96 = arith.mulf %95, %95 : vector<8x64xf32>
    %cst_33 = arith.constant dense<0.000000e+00> : vector<8xf32>
    %97 = vector.multi_reduction <add>, %96, %cst_33 [1] : vector<8x64xf32> to vector<8xf32>
    %98 = vector.shape_cast %97 : vector<8xf32> to vector<8x1xf32>
    %cst_34 = arith.constant 6.400000e+01 : f32
    %99 = vector.broadcast %cst_34 : f32 to vector<8x1xf32>
    %100 = arith.divf %98, %99 : vector<8x1xf32>
    %cst_35 = arith.constant 9.99999974E-6 : f32
    %101 = vector.broadcast %cst_35 : f32 to vector<8x1xf32>
    %102 = arith.addf %100, %101 : vector<8x1xf32>
    %103 = math.rsqrt %102 : vector<8x1xf32>
    %104 = vector.broadcast %103 : vector<8x1xf32> to vector<8x64xf32>
    %105 = arith.mulf %95, %104 : vector<8x64xf32>
    %c0_36 = arith.constant 0 : index
    %c0_37 = arith.constant 0 : index
    %106 = vector.load %arg4[%c0_36, %c0_37] : memref<1x64xf32, #tpu.memory_space<vmem>>, vector<1x64xf32>
    %107 = vector.broadcast %106 : vector<1x64xf32> to vector<8x64xf32>
    %108 = arith.mulf %105, %107 : vector<8x64xf32>
    %109 = arith.truncf %108 : vector<8x64xf32> to vector<8x64xbf16>
    %c0_38 = arith.constant 0 : index
    %c0_39 = arith.constant 0 : index
    %110 = vector.load %arg7[%c0_38, %c0_39] : memref<64x256xbf16, #tpu.memory_space<vmem>>, vector<64x256xbf16>
    %cst_40 = arith.constant dense<0.000000e+00> : vector<8x256xf32>
    %111 = tpu.matmul %109, %110, %cst_40 {dimension_numbers = #tpu.dot_dimension_numbers<[1], [0], [0], [1], [0, 0, 1, 1], [], []>} : vector<8x64xbf16>, vector<64x256xbf16>, vector<8x256xf32> -> vector<8x256xf32>
    %112 = vector.extract_strided_slice %111 {offsets = [0, 0], sizes = [8, 128], strides = [1, 1]} : vector<8x256xf32> to vector<8x128xf32>
    %113 = vector.extract_strided_slice %111 {offsets = [0, 128], sizes = [8, 128], strides = [1, 1]} : vector<8x256xf32> to vector<8x128xf32>
    %114 = arith.negf %112 : vector<8x128xf32>
    %115 = math.exp %114 : vector<8x128xf32>
    %cst_41 = arith.constant 1.000000e+00 : f32
    %116 = vector.broadcast %cst_41 : f32 to vector<8x128xf32>
    %117 = arith.addf %116, %115 : vector<8x128xf32>
    %118 = arith.divf %116, %117 : vector<8x128xf32>
    %119 = arith.mulf %112, %118 : vector<8x128xf32>
    %120 = arith.mulf %119, %113 : vector<8x128xf32>
    %121 = arith.truncf %120 : vector<8x128xf32> to vector<8x128xbf16>
    %c0_42 = arith.constant 0 : index
    %c0_43 = arith.constant 0 : index
    %122 = vector.load %arg8[%c0_42, %c0_43] : memref<128x64xbf16, #tpu.memory_space<vmem>>, vector<128x64xbf16>
    %cst_44 = arith.constant dense<0.000000e+00> : vector<8x64xf32>
    %123 = tpu.matmul %121, %122, %cst_44 {dimension_numbers = #tpu.dot_dimension_numbers<[1], [0], [0], [1], [0, 0, 1, 1], [], []>} : vector<8x128xbf16>, vector<128x64xbf16>, vector<8x64xf32> -> vector<8x64xf32>
    %124 = arith.addf %95, %123 : vector<8x64xf32>
    %c0_45 = arith.constant 0 : index
    %c0_46 = arith.constant 0 : index
    %125 = vector.load %arg13[%c0_45, %c0_46] : memref<8x64xf32, #tpu.memory_space<vmem>>, vector<8x64xf32>
    tpu.vector_store %arg13[%c0_45, %c0_46], %124 {strides = array<i32>} : memref<8x64xf32, #tpu.memory_space<vmem>>, vector<8x64xf32>,
    return
  }
  func.func @transform_0(%arg0: i32, %arg1: memref<8xi32, #tpu.memory_space<smem>>) -> (i32, i32) {
    %c0_i32 = arith.constant 0 : i32
    %c0_i32_0 = arith.constant 0 : i32
    return %arg0, %c0_i32 : i32, i32
  }
  func.func @transform_1(%arg0: i32, %arg1: memref<8xi32, #tpu.memory_space<smem>>) -> (i32, i32) {
    %c0_i32 = arith.constant 0 : i32
    %c0_i32_0 = arith.constant 0 : i32
    %c0_i32_1 = arith.constant 0 : i32
    return %c0_i32, %c0_i32_0 : i32, i32
  }
  func.func @transform_2(%arg0: i32, %arg1: memref<8xi32, #tpu.memory_space<smem>>) -> (i32, i32) {
    %c0_i32 = arith.constant 0 : i32
    %c0_i32_0 = arith.constant 0 : i32
    %c0_i32_1 = arith.constant 0 : i32
    return %c0_i32, %c0_i32_0 : i32, i32
  }
  func.func @transform_3(%arg0: i32, %arg1: memref<8xi32, #tpu.memory_space<smem>>) -> (i32, i32) {
    %c0_i32 = arith.constant 0 : i32
    %c0_i32_0 = arith.constant 0 : i32
    %c0_i32_1 = arith.constant 0 : i32
    return %c0_i32, %c0_i32_0 : i32, i32
  }
  func.func @transform_4(%arg0: i32, %arg1: memref<8xi32, #tpu.memory_space<smem>>) -> (i32, i32) {
    %c0_i32 = arith.constant 0 : i32
    %c0_i32_0 = arith.constant 0 : i32
    %c0_i32_1 = arith.constant 0 : i32
    return %c0_i32, %c0_i32_0 : i32, i32
  }
  func.func @transform_5(%arg0: i32, %arg1: memref<8xi32, #tpu.memory_space<smem>>) -> (i32, i32) {
    %c0_i32 = arith.constant 0 : i32
    %c0_i32_0 = arith.constant 0 : i32
    %c0_i32_1 = arith.constant 0 : i32
    return %c0_i32, %c0_i32_0 : i32, i32
  }
  func.func @transform_6(%arg0: i32, %arg1: memref<8xi32, #tpu.memory_space<smem>>) -> (i32, i32) {
    %c0_i32 = arith.constant 0 : i32
    %c0_i32_0 = arith.constant 0 : i32
    %c0_i32_1 = arith.constant 0 : i32
    return %c0_i32, %c0_i32_0 : i32, i32
  }
  func.func @transform_7(%arg0: i32, %arg1: memref<8xi32, #tpu.memory_space<smem>>) -> (i32, i32) {
    %c0_i32 = arith.constant 0 : i32
    %c0_i32_0 = arith.constant 0 : i32
    %c0_i32_1 = arith.constant 0 : i32
    return %c0_i32, %c0_i32_0 : i32, i32
  }
  func.func @transform_8(%arg0: i32, %arg1: memref<8xi32, #tpu.memory_space<smem>>) -> (i32, i32) {
    %c0_i32 = arith.constant 0 : i32
    %c0_i32_0 = arith.constant 0 : i32
    %c0_i32_1 = arith.constant 0 : i32
    return %c0_i32, %c0_i32_0 : i32, i32
  }
  func.func @transform_9(%arg0: i32, %arg1: memref<8xi32, #tpu.memory_space<smem>>) -> (i32, i32) {
    %c0_i32 = arith.constant 0 : i32
    %c0_i32_0 = arith.constant 0 : i32
    %c0_i32_1 = arith.constant 0 : i32
    return %c0_i32, %c0_i32_0 : i32, i32
  }
  func.func @transform_10(%arg0: i32, %arg1: memref<8xi32, #tpu.memory_space<smem>>) -> (i32, i32, i32) {
    %c0_i32 = arith.constant 0 : i32
    %c0_i32_0 = arith.constant 0 : i32
    %c0_i32_1 = arith.constant 0 : i32
    return %arg0, %c0_i32, %c0_i32_0 : i32, i32, i32
  }
  func.func @transform_11(%arg0: i32, %arg1: memref<8xi32, #tpu.memory_space<smem>>) -> (i32, i32) {
    %c0_i32 = arith.constant 0 : i32
    %c0_i32_0 = arith.constant 0 : i32
    return %arg0, %c0_i32 : i32, i32
  }
  func.func @transform_12(%arg0: i32, %arg1: memref<8xi32, #tpu.memory_space<smem>>) -> (i32, i32, i32) {
    %c0_i32 = arith.constant 0 : i32
    %c0_i32_0 = arith.constant 0 : i32
    %c0_i32_1 = arith.constant 0 : i32
    return %arg0, %c0_i32, %c0_i32_0 : i32, i32, i32
  }
}

</mosaic_0001>

<bundles_post_ra>
// kernel: transformer_block.1
= control target key start
LH: loop header
LB: loop body
LE: loop exit
PB: predicated region body
PF: predicated region fallthrough
CT: control target
= control target key end

     0   :  { %s1869_s25 = smov [#allocation4]   ;;  %s2419_s0 = inlined_call_operand.hbm [shape: s32[8], index: 0, kind: input, shape index: {}]   ;;  %s2420_s1 = inlined_call_operand.hbm [shape: f32[16,64], index: 1, kind: input, shape index: {}]   ;;  %s2421_s2 = inlined_call_operand.vmem [shape: f32[1,64], index: 2, kind: input, shape index: {}]   ;;  %s2422_s3 = inlined_call_operand.vmem [shape: f32[1,64], index: 3, kind: input, shape index: {}]   ;;  %s2423_s4 = inlined_call_operand.vmem [shape: bf16[64,256], index: 4, kind: input, shape index: {}]   ;;  %s2424_s5 = inlined_call_operand.hbm [shape: bf16[64,64], index: 5, kind: input, shape index: {}]   ;;  %s2425_s6 = inlined_call_operand.vmem [shape: bf16[64,256], index: 6, kind: input, shape index: {}]   ;;  %s2426_s7 = inlined_call_operand.vmem [shape: bf16[128,64], index: 7, kind: input, shape index: {}]   ;;  %s2427_s8 = inlined_call_operand.vmem [shape: f32[16,64], index: 8, kind: input, shape index: {}]   ;;  %s2428_s9 = inlined_call_operand.hbm [shape: f32[16,64], index: 9, kind: input, shape index: {}]   ;;  %s2429_s10 = inlined_call_operand.hbm [shape: f32[64,64], index: 10, kind: input, shape index: {}]   ;;  %s2430_s11 = inlined_call_operand.vmem [shape: bf16[2,16,64], index: 11, kind: input, shape index: {}, may-alias: {11,13}]   ;;  %s2431_s12 = inlined_call_operand.hbm [shape: f32[16,64], index: 12, kind: output, shape index: {0}]   ;;  %s2432_s13 = inlined_call_operand.vmem [shape: bf16[2,16,64], index: 13, kind: output, shape index: {1}, may-alias: {11,13}]  }
   0x1   :  { %2441 = sst [smem:[#allocation23_spill]] %s2424_s5 }
   0x2   :  { %2442 = sst [smem:[#allocation24_spill]] %s2428_s9 }
   0x3   :  { %2443 = sst [smem:[#allocation25_spill]] %s2429_s10 }
   0x4   :  { %20 = dma.hbm_to_smem %s2419_s0, 16, %s1869_s25, [#allocation3] }
   0x5   :  { %1835 = dma.done.wait [#allocation3], 16 }
   0x6   :  { %1836 = vsyncadd [#allocation3], 4294967280 }
   0x7   :  { %22 = sfence }
   0x8   :  { %23 = vsyncpa [#allocation6], 0 }
   0x9   :  { %25 = vsyncpa [#allocation6 + $0x1], 0 }
   0xa   :  { %26 = vsyncpa [#allocation9], 0 }
   0xb   :  { %27 = vsyncpa [#allocation12], 0 }
   0xc   :  { %28 = vsyncpa [#allocation7], 0 }
   0xd   :  { %30 = vsyncpa [#allocation7 + $0x1], 0  ;;  %s1960_s28 = smov 0   ;;  %s1962_s29 = smov 0  }
   0xe   :  { %s1964_s30 = smov 0   ;;  %s1966_s14 = smov 0  }
   0xf LB: > { %2444 = sst [smem:[#allocation19_spill]] %s1863_s30  ;;  %s1981_s0 = sadd.s32 4294967295, %s1867_s14   ;;  %s1867_s14 = sphi %s1966_s14, %s2468_s14   ;;  %s1863_s30 = sphi %s1964_s30, %s2470_s30   ;;  %s1859_s29 = sphi %s1962_s29, %s2472_s29   ;;  %s1855_s28 = sphi %s1960_s28, %s2471_s28  }
  0x10   : > { %s1375_s15 = sadd.s32 4294967294, %s1867_s14   ;;  %p56_p0 = scmp.ne.s32.totalorder %s1859_s29, %s1855_s28 }
  0x11   : > { %p2433_p1 = scmp.eq.s32.totalorder %s1981_s0, 0  ;;  %p301_p3 = scmp.eq.s32.totalorder %s1375_s15, 1 }
  0x12   : > { %p1376_p5 = scmp.ge.s32.totalorder %s1867_s14, 1  ;;  %p334_p7 = scmp.lt.s32.totalorder %s1867_s14, 3 }
  0x13   : > { %p1990_p4 = por %p2433_p1, %p56_p0  ;;  %p1995_p6 = por %p301_p3, %p56_p0 }
  0x14   : > { %p2000_p8 = pnand %p1376_p5, %p334_p7  ;;  %s1870_s19 = smov [#allocation8]  }
  0x15   : > { %s2445_s16 = scalar_select %p1990_p4, 1, 0 }
  0x16   : > { %s2446_s17 = scalar_select %p1995_p6, 1, 0 }
  0x17   : > { %s2448_s18 = scalar_select %p2000_p8, 1, 0 }
  0x18   : > { %2447 = sst [smem:[#allocation20_spill]] %s2446_s17  ;;  %s355_s20 = sshll.u32 %s1870_s19, 4  ;;  %s356_s20 = int_to_ptr.vmem [resolvable:$true] %s355_s20 }
  0x19   : > { %p1557_p9 = pneg %p2000_p8  ;;  %s1871_s22 = smov [#allocation10]  }
  0x1a   : > { %s377_s23 = sshll.u32 %s1871_s22, 4  ;;  %s1698_s24 = scalar_lea.vmem %s356_s20, 512  ;;  %s378_s23 = int_to_ptr.vmem [resolvable:$true] %s377_s23 }
  0x1b   : > { %p2009_p11 = pnand %p1557_p9, %p2433_p1  ;;  %p1699_p13 = scmp.ne.s32.totalorder %s356_s20, %s1698_s24 }
  0x1c   : > { %p1706_p5 = scmp.lt.s32.totalorder %s356_s20, %s356_s20  ;;  %p1707_p7 = scmp.lt.s32.totalorder %s1698_s24, %s1698_s24 }
  0x1d   : > { %p1689_p12 = pneg %p2009_p11 }
  0x1e   : > { %p1708_p10 = por %p1707_p7, %p1706_p5 }
  0x1f   : > { %p1701_p0 = pnand %p1699_p13, %p1689_p12 }
  0x21   : > { %p1702_p3 = pneg %p1701_p0 }
  0x23   : > { %p1709_p9 = pnand %p1708_p10, %p1702_p3 }
  0x25   : > { %1712 = shalt.err (!%p1709_p9)
}
  0x26   : > { %s1872_s25 = smov 64   ;;  %s1873_s26 = smov 4  }
  0x27   : > { %s2450_s5 = sld [smem:[#allocation23_spill]]  ;;  %s1724_s19 = scalar_lea.vmem %s378_s23, 256 }
  0x28   : > { %p1725_p1 = scmp.ne.s32.totalorder %s378_s23, %s1724_s19  ;;  %p1732_p2 = scmp.lt.s32.totalorder %s378_s23, %s378_s23 }
  0x29   : > { %p1733_p6 = scmp.lt.s32.totalorder %s1724_s19, %s1724_s19 }
  0x2a   : > { %p1727_p13 = pnand %p1725_p1, %p1689_p12 }
  0x2b   : > { %p1734_p5 = por %p1733_p6, %p1732_p2 }
  0x2c   : > { %p1728_p0 = pneg %p1727_p13 }
  0x2d   : > { %1560 = dma.hbm_to_vmem [thread:$0]  (!%p2009_p11), %s2450_s5, 512, %s356_s20, [#allocation9], %s1872_s25, %s1872_s25, %s1873_s26  }
  0x2e   : > { %p1735_p10 = pnand %p1734_p5, %p1728_p0 }
  0x30   : > { %1738 = shalt.err (!%p1735_p10)
}
  0x31   : > { %s1874_s22 = smov 128   ;;  %s1875_s24 = smov 8  }
  0x32   : > { %s2451_s9 = sld [smem:[#allocation24_spill]]  ;;  %s1876_s20 = smov [#allocation11]  }
  0x33   : > { %s390_s25 = sshll.u32 %s1876_s20, 4  ;;  %s2032_s26 = sadd.s32 1, %s1867_s14   ;;  %s391_s25 = int_to_ptr.vmem [resolvable:$true] %s390_s25 }
  0x34   : > { %2452 = sst [smem:[#allocation21_spill]] %s2032_s26  ;;  %s1750_s15 = scalar_lea.vmem %s391_s25, 1024 }
  0x35   : > { %p1751_p1 = scmp.ne.s32.totalorder %s391_s25, %s1750_s15  ;;  %p1758_p3 = scmp.lt.s32.totalorder %s391_s25, %s391_s25 }
  0x36   : > { %p1759_p7 = scmp.lt.s32.totalorder %s1750_s15, %s1750_s15 }
  0x37   : > { %p1753_p2 = pnand %p1751_p1, %p1689_p12 }
  0x38   : > { %1563 = dma.hbm_to_vmem [thread:$0]  (!%p2009_p11), %s2451_s9, 256, %s378_s23, [#allocation9], %s1874_s22, %s1874_s22, %s1875_s24  }
  0x39   : > { %p1754_p6 = pneg %p1753_p2  ;;  %p1760_p9 = por %p1759_p7, %p1758_p3 }
  0x3b   : > { %p1761_p13 = pnand %p1760_p9, %p1754_p6 }
  0x3d   : > { %1764 = shalt.err (!%p1761_p13)
}
  0x3e   : > { %s2453_s10 = sld [smem:[#allocation25_spill]]  ;;  %s40_s19 = ssub.s32 %s1867_s14, %s2032_s26 }
  0x3f   : > { %s43_s27 = sadd.s32 1, %s1863_s30  ;;  %p41_p12 = scmp.eq.s32.totalorder %s40_s19, 0 }
  0x40   : > { %p50_p0 = scmp.ne.s32.totalorder %s1863_s30, %s1859_s29  ;;  %p51_p5 = scmp.eq.s32.totalorder %s1867_s14, 0 }
  0x41   : > { %p1578_p10 = scmp.lt.s32.totalorder %s1867_s14, 2  ;;  %p2455_p2 = scmp.eq.s32.totalorder %s1981_s0, 1 }
  0x42   : > { %s2050_s21 = scalar_select %p41_p12, %s1863_s30, %s43_s27  }
  0x43   : > { %p52_p1 = por %p51_p5, %p50_p0  ;;  %p2054_p6 = por %p2455_p2, %p50_p0 }
  0x44   : > { %1566 = dma.hbm_to_vmem [thread:$0]  (!%p2009_p11), %s2453_s10, 1024, %s391_s25, [#allocation12], %s1874_s22, %s1874_s22, %s1875_s24  }
  0x45   : > { %2454 = sst [smem:[#allocation22_spill]] %s2050_s21  ;;  %s404_s15 = sand.u32 1, %s1863_s30  }
  0x46   : > { %s2456_s20 = scalar_select %p2054_p6, 1, 0 }
  0x47   : > { %s1382_s17 = sshll.u32 %s1867_s14, 7  ;;  %s1381_s23 = sshll.u32 %s404_s15, 3 }
  0x48   : > { %s2063_s22 = scalar_lea.hbm %s2420_s1, %s1382_s17  ;;  %s408_s24 = scalar_lea.vmem [#allocation5], %s1381_s23 }
  0x49   : > { %s415_s25 = sshll.u32 %s408_s24, 4  ;;  %p2065_p11 = pnand %p1578_p10, %p52_p1  ;;  %s416_s25 = int_to_ptr.vmem [resolvable:$true] %s415_s25 }
  0x4a   : > { %s405_s27 = scalar_lea.sflag [#allocation6], %s404_s15  ;;  %s1765_s10 = scalar_lea.hbm %s2063_s22, 128 }
  0x4b   : > { %p1766_p3 = scmp.ne.s32.totalorder %s2063_s22, %s1765_s10  ;;  %p1767_p7 = pneg %p2065_p11 }
  0x4c   : > { %s1770_s17 = scalar_lea.hbm %s2420_s1, 256  ;;  %p1771_p12 = scmp.lt.s32.totalorder %s2063_s22, %s2420_s1 }
  0x4d   : > { %p1768_p9 = pnand %p1767_p7, %p1766_p3  ;;  %p1772_p0 = scmp.lt.s32.totalorder %s1770_s17, %s1765_s10 }
  0x4f   : > { %p1769_p13 = pneg %p1768_p9  ;;  %p1773_p5 = por %p1772_p0, %p1771_p12 }
  0x51   : > { %p1774_p10 = pnand %p1773_p5, %p1769_p13 }
  0x53   : > { %1777 = shalt.err (!%p1774_p10)
}
  0x54   : > { %s1778_s24 = scalar_lea.vmem %s416_s25, 128  ;;  %s1877_s15 = smov [#allocation5]  }
  0x55   : > { %p1779_p1 = scmp.ne.s32.totalorder %s416_s25, %s1778_s24  ;;  %s1783_s30 = sshll.u32 %s1877_s15, 4  ;;  %s1784_s30 = int_to_ptr.vmem [resolvable:$false] %s1783_s30 }
  0x56   : > { %s1785_s26 = scalar_lea.vmem %s1784_s30, 256  ;;  %p1786_p3 = scmp.lt.s32.totalorder %s416_s25, %s1784_s30 }
  0x57   : > { %p1781_p2 = pnand %p1779_p1, %p1767_p7  ;;  %p1787_p9 = scmp.lt.s32.totalorder %s1785_s26, %s1778_s24 }
  0x59   : > { %p1782_p6 = pneg %p1781_p2  ;;  %p1788_p4 = por %p1787_p9, %p1786_p3 }
  0x5b   : > { %p1789_p8 = pnand %p1788_p4, %p1782_p6 }
  0x5d   : > { %1792 = shalt.err (!%p1789_p8)
}
  0x5e   : > { %1570 = dma.hbm_to_vmem [thread:$0]  (!%p2065_p11), %s2063_s22, 128, %s416_s25, %s405_s27  }
  0x5f   : > { %p2458_p13 = scmp.ne.s32.totalorder %s2448_s18, 0 }
  0x60   : > { %s2086_s10 = sand.u32 (!%p2458_p13), 1, %s1859_s29   ;;  %p2459_p4 = scmp.ne.s32.totalorder (!%p2458_p13), %s2445_s16, 0 }
  0x61   : > { %432 = sbr.rel (%p2458_p13) target bundleno = 2135 (0x857), region = 64  ;;  %s1384_s21 = sshll.u32 (!%p2458_p13), %s2086_s10, 3 }
  0x62   : > { %s435_s30 = scalar_lea.sflag (!%p2458_p13), [#allocation6], %s2086_s10  ;;  %s438_s26 = scalar_lea.vmem (!%p2458_p13), [#allocation5], %s1384_s21 }
  0x66   : > { %1838 = dma.done.wait (%p2459_p4), %s435_s30, 128  }
  0x67   : > { %1840 = vsyncadd (%p2459_p4), %s435_s30, 4294967168  ;;  %p2460_p8 = scmp.eq.s32.totalorder %s1981_s0, 0 }
  0x69   : > { %1842 = dma.done.wait (%p2460_p8), [#allocation9], 768   ;;  %p2461_p6 = pmov %p2460_p8 }
  0x6b   : > { %1844 = vsyncadd (%p2461_p6), [#allocation9], 4294966528  ;;  %p2462_p11 = pmov %p2461_p6 }
  0x6c   : > { %p2463_p7 = pmov %p2461_p6 }
  0x6d   : > { %1846 = dma.done.wait (%p2462_p11), [#allocation12], 1024  }
  0x6e   : > { %1848 = vsyncadd (%p2463_p7), [#allocation12], 4294966272  ;;  %v2104_v0 = vld [vmem:[%s438_s26] sm:$0xff]  ;;  %vm515_vm0 = vcmask 523264   ;;  %v1634_v5 = vld [vmem:[%s2423_s4 + $0x24] ss:$8 sps:$4 sm:$0xff]  }
  0x6f   : > { %v514_v1 = vmul.f32 %v2104_v0, %v2104_v0  ;;  %v1631_v3 = vld [vmem:[%s2423_s4 + $0x34] ss:$8 sps:$4 sm:$0xff]   ;;  %v1633_v4 = vld [vmem:[%s2423_s4 + $0x30] ss:$8 sps:$4 sm:$0xff]   ;;  %v1636_v6 = vld [vmem:[%s2423_s4 + $0x20] ss:$8 sps:$4 sm:$0xff]  }
  0x70   : > { %592 = vmatprep.subr.bf16.mxu0 %v1631_v3  ;;  %v1878_v7 = vmov 0   ;;  %v1637_v8 = vld [vmem:[%s2423_s4 + $0x14] ss:$8 sps:$4 sm:$0xff]   ;;  %v1639_v9 = vld [vmem:[%s2423_s4 + $0x10] ss:$8 sps:$4 sm:$0xff]   ;;  %s2134_s22 = sld [smem:[#allocation4]] }
  0x71   : > { %v516_v2 = vsel %vm515_vm0, %v514_v1, 0.0  ;;  %593 = vmatpush1.bf16.msra.mxu0 %v1633_v4  ;;  %616 = vmatprep.mubr.bf16.mxu0 %v1878_v7  ;;  %v1640_v10 = vld [vmem:[%s2423_s4 + $0x4] ss:$8 sps:$4 sm:$0xff]   ;;  %v1642_v11 = vld [vmem:[%s2423_s4] ss:$8 sps:$4 sm:$0xff]   ;;  %s1879_s19 = smov 32  }
  0x72   : > { %517 = vadd.xlane.f32.xlu0 %v516_v2  ;;  %594 = vmatprep.subr.bf16.mxu0 %v1634_v5  ;;  %v1393_v17 = vld [vmem:[%s2421_s2] ss:$0 sm:$0xff]  ;;  %p501_p12 = scmp.lt.s32.totalorder %s1981_s0, 1  ;;  %s1880_s30 = smov 96   ;;  %vm660_vm1 = vcmask 261120   ;;  %vm676_vm2 = vcmask 519168  }
  0x73   : > { %s1881_s26 = smov 64   ;;  %v1883_v44 = vmov 0.0   ;;  %vm1885_vm3 = vmmov 0   ;;  %vm693_vm4 = vcmask 130048   ;;  %vm698_vm5 = vcmask 392192   ;;  %v2194_v59 = vld [vmem:[#allocation11 + $0x30] sm:$0xff] }
  0x74   : > { %s2145_s9 = scalar_select %p501_p12, %s1981_s0, 1  ;;  %1473 = vmatprep.subr.bf16.mxu1 %v1883_v44  ;;  %1481 = vmatprep.mubr.msk.bf16.mxu1 %vm1885_vm3, %v1883_v44  ;;  %v2196_v60 = vld [vmem:[#allocation11 + $0x38] sm:$0xff]  ;;  %v2199_v1 = vld [vmem:[#allocation11] sm:$0xff]  ;;  %v2203_v4 = vld [vmem:[#allocation11 + $0x10] sm:$0xff] }
  0x75   : > { %595 = vmatpush1.bf16.msra.mxu0 %v1636_v6  ;;  %v2205_v5 = vld [vmem:[#allocation11 + $0x20] sm:$0xff]  ;;  %v2207_v6 = vld [vmem:[#allocation11 + $0x28] sm:$0xff]  ;;  %s1433_s18 = sshll.u32 %s1981_s0, 7  ;;  %s1215_s0 = scalar_lea.sflag [#allocation7], %s2086_s10 }
  0x76   : > { %596 = vmatprep.subr.bf16.mxu0 %v1637_v8  ;;  %s627_s25 = scalar_lea.vmem [#allocation10], %s2134_s22  ;;  %s1436_s17 = sshll.u32 %s2145_s9, 3 }
  0x77   : > { %v628_v12 = vld [vmem:[%s627_s25] sm:$0xff]  ;;  %s505_s15 = scalar_lea.vmem %s2430_s11, %s1436_s17  ;;  %s625_s25 = scalar_lea.vmem %s2427_s8, %s2134_s22 }
  0x78   : > { %v1441_v21 = vld [vmem:[%s505_s15] sm:$0xff]   ;;  %s664_s27 = scalar_lea.vmem [#allocation2], %s2134_s22  ;;  %s510_s24 = scalar_lea.vmem %s2432_s13, %s1436_s17 }
  0x79   : > { %597 = vmatpush1.bf16.msra.mxu0 %v1639_v9  ;;  %v1442_v22 = vunpack.c.l.bf16 %v1441_v21  ;;  %v1443_v23 = vunpack.c.h.bf16 %v1441_v21  ;;  %v2163_v30 = vld [vmem:[%s625_s25] sm:$0xff]  ;;  %s1882_s15 = smov 16   ;;  %s1884_s9 = smov 112  }
  0x7a   : > { %598 = vmatprep.subr.bf16.mxu0 %v1640_v10  ;;  %s493_s25 = scalar_lea.vmem [#allocation13], %s1384_s21  ;;  %p2464_p5 = scmp.ne.s32.totalorder %s2456_s20, 0 }
  0x7b   : > { %654 = vst.msk [vmem:[#allocation2] sm:$0xff] %vm515_vm0, %v1442_v22  ;;  %655 = vst.msk [vmem:[#allocation2 + $0x8] sm:$0xff] %vm515_vm0, %v1443_v23 }
  0x7d   : > { %599 = vmatpush1.bf16.msra.mxu0 %v1642_v11 }
  0x7e   : > { %1485 = vmatprep.subr.bf16.mxu0 %v1883_v44 }
  0x88   : > { %641 = vrot.lane.b32.xlu0 %v628_v12, %s1879_s19 }
  0xfb   : > { %v518_v13 = vpop.xlane.xlu0 %517 }
  0xfc   : > { %v520_v14 = vmul.f32 0.015625, %v518_v13 }
  0xfe   : > { %v521_v15 = vadd.f32 1e-05, %v520_v14  ;;  %v2221_v14 = vld [vmem:[#allocation11 + $0x8] sm:$0xff] }
  0xff   : > { %v642_v25 = vpop.permute.xlu0 %641 }
 0x100   : > { %1667 = vrsqrt.f32 %v521_v15  ;;  %v722_v15 = vld [vmem:[#allocation11 + $0x18] sm:$0xff] }
 0x10d   : > { %v1668_v16 = vpop.eup %1667 }
 0x10e   : > { %v523_v18 = vmul.f32 %v1668_v16, %v2104_v0 }
 0x110   : > { %v531_v19 = vmul.f32 %v1393_v17, %v523_v18 }
 0x112   : > { %v532_v20 = vpack.c.bf16 %v531_v19, %v531_v19 }
 0x114   : > { %1402 = vmatmul.mubr.msk.bf16.vlgmr.msra.gmra.mxu0 %vm515_vm0, %v532_v20 }
 0x115   : > { %1493 = vmatprep.mubr.msk.bf16.mxu0 %vm1885_vm3, %v1883_v44 }
 0x1d4   : > { %v2153_v24 = vpop.f32.mrf.mxu0 }
 0x1d6   : > { %v620_v26 = vpop.f32.mrf.mxu0 }
 0x1d7   : > { %v644_v27 = vmul.f32 %v642_v25, %v620_v26  ;;  %v640_v32 = vmul.f32 %v2163_v30, %v620_v26 }
 0x1d8   : > { %v622_v28 = vpop.f32.mrf.mxu0 }
 0x1d9   : > { %646 = vrot.lane.b32.xlu1 %v644_v27, %s1880_s30 }
 0x1da   : > { %v623_v29 = vpop.f32.mrf.mxu0 }
 0x1dd   : > { %657 = vrot.lane.b32.xlu1 %v620_v26, %s1880_s30 }
 0x1e1   : > { %631 = vrot.lane.b32.xlu1 %v628_v12, %s1881_s26 }
 0x24b   : > { %v647_v31 = vpop.permute.xlu1 %646 }
 0x24c   : > { %v649_v33 = vadd.f32 %v647_v31, %v640_v32 }
 0x24f   : > { %v658_v34 = vpop.permute.xlu1 %657 }
 0x250   : > { %v661_v35 = vsel %vm660_vm1, %v649_v33, %v658_v34 }
 0x251   : > { %v662_v36 = vpack.c.bf16 %v661_v35, %v661_v35 }
 0x253   : > { %v663_v37 = vunpack.c.l.bf16 %v662_v36  ;;  %v632_v38 = vpop.permute.xlu1 %631 }
 0x254   : > { %v634_v39 = vmul.f32 %v632_v38, %v2153_v24 }
 0x255   : > { %665 = vst.msk [vmem:[%s664_s27] sm:$0xff] %vm515_vm0, %v663_v37  ;;  %s1233_s27 = sshll.u32 %s493_s25, 4  ;;  %s2377_s27 = int_to_ptr.vmem [resolvable:$true] %s1233_s27 }
 0x256   : > { %636 = vrot.lane.b32.xlu0 %v634_v39, %s1881_s26  ;;  %s1793_s21 = scalar_lea.vmem %s2377_s27, 128 }
 0x257   : > { %p1794_p0 = scmp.ne.s32.totalorder %s2377_s27, %s1793_s21 }
 0x259   : > { %p1795_p10 = pnand %p1794_p0, %p2464_p5 }
 0x25b   : > { %p1796_p1 = pneg %p1795_p10 }
 0x25c   : > { %v666_v40 = vld [vmem:[#allocation2] sm:$0xff]  ;;  %v667_v41 = vld [vmem:[#allocation2 + $0x8] sm:$0xff] }
 0x25d   : > { %701 = vrot.lane.b32.xlu0 %v666_v40, %s1880_s30  ;;  %v1438_v42 = vpack.c.bf16 %v666_v40, %v666_v40  ;;  %681 = vrot.lane.b32.xlu1 %v666_v40, %s1882_s15  ;;  %v1439_v43 = vpack.c.bf16 %v667_v41, %v667_v41 }
 0x25f   : > { %677 = vst.msk [vmem:[%s510_s24] sm:$0xf] %vm676_vm2, %v1438_v42  ;;  %678 = vst.msk [vmem:[%s510_s24 + $0x4] sm:$0xf] %vm676_vm2, %v1439_v43  ;;  %s2375_s24 = scalar_lea.hbm %s2431_s12, %s1433_s18 }
 0x261   : > { %703 = vrot.lane.b32.xlu0 %v667_v41, %s1880_s30  ;;  %683 = vrot.lane.b32.xlu1 %v667_v41, %s1882_s15  ;;  %s1886_s15 = smov [#allocation13]  }
 0x265   : > { %707 = vrot.lane.b32.xlu0 %v666_v40, %s1884_s9  ;;  %687 = vrot.lane.b32.xlu1 %v666_v40, %s1879_s19 }
 0x269   : > { %709 = vrot.lane.b32.xlu0 %v667_v41, %s1884_s9  ;;  %689 = vrot.lane.b32.xlu1 %v667_v41, %s1879_s19  ;;  %s1797_s9 = sshll.u32 %s1886_s15, 4  ;;  %s1798_s9 = int_to_ptr.vmem [resolvable:$false] %s1797_s9 }
 0x26a   : > { %p1800_p2 = scmp.lt.s32.totalorder %s2377_s27, %s1798_s9 }
 0x2c8   : > { %v2185_v45 = vpop.permute.xlu0 %636 }
 0x2cf   : > { %v702_v46 = vpop.permute.xlu0 %701  ;;  %v682_v47 = vpop.permute.xlu1 %681 }
 0x2d0   : > { %v694_v50 = vsel %vm693_vm4, %v666_v40, %v682_v47 }
 0x2d1   : > { %v696_v55 = vsel %vm660_vm1, %v694_v50, %v682_v47  ;;  %v807_v47 = vlaneseq  ;;  %v812_v50 = vstv %s2134_s22  ;;  %s1799_s22 = scalar_lea.vmem %s1798_s9, 256 }
 0x2d2   : > { %p1801_p3 = scmp.lt.s32.totalorder %s1799_s22, %s1793_s21 }
 0x2d3   : > { %v704_v48 = vpop.permute.xlu0 %703  ;;  %v684_v49 = vpop.permute.xlu1 %683 }
 0x2d4   : > { %v695_v53 = vsel %vm693_vm4, %v667_v41, %v684_v49  ;;  %p1802_p9 = por %p1801_p3, %p1800_p2 }
 0x2d5   : > { %v697_v61 = vsel %vm660_vm1, %v695_v53, %v684_v49  ;;  %v811_v49 = vshrl.u32 %v807_v47, 7 }
 0x2d6   : > { %p1803_p13 = pnand %p1802_p9, %p1796_p1 }
 0x2d7   : > { %v708_v51 = vpop.permute.xlu0 %707  ;;  %v688_v52 = vpop.permute.xlu1 %687 }
 0x2d8   : > { %v713_v54 = vsel %vm693_vm4, %v702_v46, %v708_v51  ;;  %v699_v58 = vsel %vm698_vm5, %v696_v55, %v688_v52  ;;  %v813_v52 = vadd.s32 %v812_v50, %v811_v49  ;;  %v1664_v49 = vld [vmem:[%s2426_s7 + $0x10] sm:$0xff]   ;;  %v1665_v50 = vld [vmem:[%s2426_s7 + $0x8] sm:$0xff]  }
 0x2d9   : > { %v715_v56 = vsel %vm660_vm1, %v713_v54, %v708_v51  ;;  %v733_v9 = vmul.f32 %v2194_v59, %v699_v58  ;;  %v731_v31 = vmul.f32 %v2205_v5, %v699_v58  ;;  %v729_v35 = vmul.f32 %v2203_v4, %v699_v58 }
 0x2da   : > { %v717_v57 = vsel %vm698_vm5, %v715_v56, %v666_v40  ;;  %v727_v39 = vmul.f32 %v2199_v1, %v699_v58  ;;  %v826_v56 = vpack.c.bf16 %v2196_v60, %v2194_v59  ;;  %v824_v58 = vpack.c.bf16 %v722_v15, %v2203_v4 }
 0x2db   : > { %v710_v62 = vpop.permute.xlu0 %709  ;;  %v690_v63 = vpop.permute.xlu1 %689  ;;  %v2213_v11 = vmul.f32 %v2199_v1, %v717_v57  ;;  %v2216_v12 = vmul.f32 %v2203_v4, %v717_v57  ;;  %v2219_v13 = vmul.f32 %v2205_v5, %v717_v57  ;;  %v2233_v21 = vmul.f32 %v2194_v59, %v717_v57  ;;  %v1645_v4 = vld [vmem:[#allocation8 + $0x8] sm:$0xff]  }
 0x2dc   : > { %v714_v2 = vsel %vm693_vm4, %v704_v48, %v710_v62  ;;  %v700_v3 = vsel %vm698_vm5, %v697_v61, %v690_v63  ;;  %v808_v48 = vand.u32 127, %v807_v47  ;;  %1486 = vmatpush3.bf16.msra.mxu0 %v826_v56  ;;  %v825_v57 = vpack.c.bf16 %v2207_v6, %v2205_v5  ;;  %v1646_v5 = vld [vmem:[#allocation8] sm:$0xff]  }
 0x2dd   : > { %v716_v8 = vsel %vm660_vm1, %v714_v2, %v710_v62  ;;  %v734_v10 = vmul.f32 %v2196_v60, %v700_v3  ;;  %v732_v23 = vmul.f32 %v2207_v6, %v700_v3  ;;  %v730_v34 = vmul.f32 %v722_v15, %v700_v3  ;;  %1487 = vmatprep.subr.bf16.mxu0 %v1883_v44  ;;  %v1662_v47 = vld [vmem:[%s2426_s7 + $0x20] sm:$0xff]  }
 0x2de   : > { %v718_v16 = vsel %vm698_vm5, %v716_v8, %v667_v41  ;;  %v728_v38 = vmul.f32 %v2221_v14, %v700_v3  ;;  %v629_v41 = vmul.f32 %v2163_v30, %v2153_v24  ;;  %v809_v51 = vand.u32 15, %v808_v48  ;;  %v1644_v3 = vld [vmem:[#allocation8 + $0x10] sm:$0xff]   ;;  %v1663_v48 = vld [vmem:[%s2426_s7 + $0x18] sm:$0xff]  }
 0x2df   : > { %v2225_v17 = vmul.f32 %v2221_v14, %v718_v16  ;;  %v2227_v18 = vmul.f32 %v722_v15, %v718_v16  ;;  %v2230_v19 = vmul.f32 %v2207_v6, %v718_v16  ;;  %v738_v20 = vpack.c.bf16 %v734_v10, %v733_v9 }
 0x2e0   : > { %v2236_v22 = vmul.f32 %v2196_v60, %v718_v16  ;;  %v737_v32 = vpack.c.bf16 %v732_v23, %v731_v31  ;;  %v736_v36 = vpack.c.bf16 %v730_v34, %v729_v35  ;;  %v735_v40 = vpack.c.bf16 %v728_v38, %v727_v39  ;;  %1488 = vmatpush3.bf16.msra.mxu0 %v825_v57  ;;  %v1653_v31 = vld [vmem:[%s2425_s6 + $0x10] ss:$8 sps:$4 sm:$0xff]   ;;  %v1413_v38 = vld [vmem:[%s2422_s3] ss:$0 sm:$0xff] }
 0x2e1   : > { %v765_v25 = vsel %vm515_vm0, %v738_v20, 0  ;;  %v749_v26 = vpack.c.bf16 %v2230_v19, %v2219_v13  ;;  %v748_v27 = vpack.c.bf16 %v2227_v18, %v2216_v12  ;;  %v747_v28 = vpack.c.bf16 %v2225_v17, %v2213_v11  ;;  %1489 = vmatprep.subr.bf16.mxu0 %v1883_v44 }
 0x2e2   : > { %1474 = vmatpush3.bf16.xpose.msra.mxu1 %v765_v25  ;;  %v750_v29 = vpack.c.bf16 %v2236_v22, %v2233_v21  ;;  %v762_v33 = vsel %vm515_vm0, %v737_v32, 0  ;;  %v759_v37 = vsel %vm515_vm0, %v736_v36, 0  ;;  %v756_v42 = vsel %vm515_vm0, %v735_v40, 0  ;;  %v1658_v32 = vld [vmem:[%s2425_s6 + $0x4] ss:$8 sps:$4 sm:$0xff]  }
 0x2e3   : > { %1475 = vmatprep.subr.bf16.mxu1 %v1883_v44  ;;  %v639_v43 = vadd.f32 %v2185_v45, %v629_v41  ;;  %vm814_vm6 = vcmp.le.s32.totalorder %v809_v51, %v813_v52  ;;  %v823_v61 = vpack.c.bf16 %v2221_v14, %v2199_v1  ;;  %v1643_v1 = vld [vmem:[#allocation8 + $0x18] sm:$0xff]   ;;  %v1666_v51 = vld [vmem:[%s2426_s7] sm:$0xff]  }
 0x2e4   : > { %1490 = vmatpush3.bf16.msra.mxu0 %v824_v58 }
 0x2e5   : > { %v751_v46 = vpack.c.bf16 %v639_v43, %v639_v43  ;;  %1491 = vmatprep.subr.bf16.mxu0 %v1883_v44  ;;  %v1660_v43 = vld [vmem:[%s2426_s7 + $0x30] sm:$0xff]  }
 0x2e8   : > { %1492 = vmatpush3.bf16.msra.mxu0 %v823_v61 }
 0x2e9   : > { %1497 = vmatprep.subr.bf16.mxu0 %v1883_v44 }
 0x2ea   : > { %1476 = vmatpush3.bf16.xpose.msra.mxu1 %v762_v33  ;;  %v1656_v33 = vld [vmem:[%s2425_s6] ss:$8 sps:$4 sm:$0xff]  }
 0x2eb   : > { %1477 = vmatprep.subr.bf16.mxu1 %v1883_v44 }
 0x2f2   : > { %1478 = vmatpush3.bf16.xpose.msra.mxu1 %v759_v37 }
 0x2f3   : > { %1479 = vmatprep.subr.bf16.mxu1 %v1883_v44 }
 0x2fa   : > { %1480 = vmatpush3.bf16.xpose.msra.mxu1 %v756_v42  ;;  %v1659_v42 = vld [vmem:[%s2426_s7 + $0x38] sm:$0xff]  }
 0x2fb   : > { %1509 = vmatprep.subr.bf16.mxu1 %v1883_v44 }
 0x301   : > { %1482 = vmatmul.mubr.msk.bf16.vlgmr.msra.gmra.mxu1 %vm515_vm0, %v751_v46  ;;  %v1661_v46 = vld [vmem:[%s2426_s7 + $0x28] sm:$0xff]  }
 0x302   : > { %1517 = vmatprep.mubr.msk.bf16.mxu1 %vm1885_vm3, %v1883_v44  ;;  %1510 = vmatpush3.bf16.msra.mxu1 %v1643_v1 }
 0x303   : > { %1511 = vmatprep.subr.bf16.mxu1 %v1883_v44 }
 0x306   : > { %1512 = vmatpush3.bf16.msra.mxu1 %v1644_v3 }
 0x307   : > { %1513 = vmatprep.subr.bf16.mxu1 %v1883_v44 }
 0x30a   : > { %1514 = vmatpush3.bf16.msra.mxu1 %v1645_v4 }
 0x30b   : > { %1515 = vmatprep.subr.bf16.mxu1 %v1883_v44 }
 0x30e   : > { %1516 = vmatpush3.bf16.msra.mxu1 %v1646_v5 }
 0x30f   : > { %1521 = vmatprep.subr.bf16.mxu1 %v1883_v44 }
 0x3c1   : > { %v801_v24 = vpop.f32.mrf.mxu1 }
 0x3c2   : > { %v815_v30 = vsel %vm814_vm6, %v801_v24, -1e+30 }
 0x3c3   : > { %v1483_v53 = vpop.f32.mrf.mxu1  ;;  %v816_v45 = vsel %vm515_vm0, %v815_v30, -inf }
 0x3c4   : > { %817 = vmax.xlane.f32.xlu1 %v816_v45 }
 0x3c5   : > { %v804_v54 = vpop.f32.mrf.mxu1 }
 0x3c7   : > { %v1484_v55 = vpop.f32.mrf.mxu1 }
 0x44d   : > { %v818_v59 = vpop.xlane.xlu1 %817 }
 0x44e   : > { %v819_v60 = vsub.f32 %v815_v30, %v818_v59 }
 0x450   : > { %v820_v62 = vmul.f32 1.442695, %v819_v60 }
 0x452   : > { %1669 = vpow2.f32 %v820_v62 }
 0x45f   : > { %v1670_v63 = vpop.eup %1669 }
 0x460   : > { %v822_v2 = vpack.c.bf16 %v1670_v63, %v1670_v63 }
 0x462   : > { %1494 = vmatmul.mubr.msk.bf16.vlgmr.msra.gmra.mxu0 %vm515_vm0, %v822_v2 }
 0x463   : > { %1498 = vmatpush3.bf16.msra.mxu0 %v750_v29  ;;  %1505 = vmatprep.mubr.msk.bf16.mxu0 %vm1885_vm3, %v1883_v44  ;;  %v1655_v29 = vld [vmem:[%s2425_s6 + $0x14] ss:$8 sps:$4 sm:$0xff]  }
 0x464   : > { %1499 = vmatprep.subr.bf16.mxu0 %v1883_v44 }
 0x467   : > { %1500 = vmatpush3.bf16.msra.mxu0 %v749_v26  ;;  %v1647_v26 = vld [vmem:[%s2425_s6 + $0x30] ss:$8 sps:$4 sm:$0xff]  }
 0x468   : > { %1501 = vmatprep.subr.bf16.mxu0 %v1883_v44 }
 0x46b   : > { %1502 = vmatpush3.bf16.msra.mxu0 %v748_v27  ;;  %v1649_v27 = vld [vmem:[%s2425_s6 + $0x34] ss:$8 sps:$4 sm:$0xff]  }
 0x46c   : > { %1503 = vmatprep.subr.bf16.mxu0 %v1883_v44 }
 0x46f   : > { %1504 = vmatpush3.bf16.msra.mxu0 %v747_v28  ;;  %v1650_v28 = vld [vmem:[%s2425_s6 + $0x20] ss:$8 sps:$4 sm:$0xff]  }
 0x470   : > { %1066 = vmatprep.subr.bf16.mxu0 %v1649_v27 }
 0x472   : > { %1506 = vmatmul.mubr.msk.bf16.vlgmr.msra.gmra.mxu0 %vm515_vm0, %v822_v2 }
 0x473   : > { %1090 = vmatprep.mubr.bf16.mxu0 %v1878_v7  ;;  %1067 = vmatpush1.bf16.msra.mxu0 %v1647_v26 }
 0x522   : > { %v864_v6 = vpop.f32.mrf.mxu0 }
 0x523   : > { %v870_v8 = vmax.f32 %v864_v6, 1e-30 }
 0x524   : > { %v1495_v9 = vpop.f32.mrf.mxu0 }
 0x525   : > { %1671 = vrcp.f32 %v870_v8 }
 0x526   : > { %v867_v7 = vpop.f32.mrf.mxu0 }
 0x528   : > { %v1496_v10 = vpop.f32.mrf.mxu0 }
 0x532   : > { %v1672_v11 = vpop.eup %1671  ;;  %v905_v12 = vpop.f32.mrf.mxu0 }
 0x533   : > { %v912_v13 = vmul.f32 %v1672_v11, %v905_v12 }
 0x534   : > { %v1507_v14 = vpop.f32.mrf.mxu0 }
 0x535   : > { %v913_v15 = vpack.c.bf16 %v912_v13, %v912_v13 }
 0x536   : > { %v908_v16 = vpop.f32.mrf.mxu0 }
 0x537   : > { %1518 = vmatmul.mubr.msk.bf16.vlgmr.msra.gmra.mxu1 %vm515_vm0, %v913_v15 }
 0x538   : > { %v1508_v17 = vpop.f32.mrf.mxu0  ;;  %1537 = vmatprep.mubr.msk.bf16.mxu1 %vm1885_vm3, %v1883_v44  ;;  %1522 = vmatpush3.bf16.msra.mxu1 %v1659_v42 }
 0x539   : > { %1523 = vmatprep.subr.bf16.mxu1 %v1883_v44 }
 0x53c   : > { %1524 = vmatpush3.bf16.msra.mxu1 %v1660_v43 }
 0x53d   : > { %1525 = vmatprep.subr.bf16.mxu1 %v1883_v44 }
 0x540   : > { %1526 = vmatpush3.bf16.msra.mxu1 %v1661_v46 }
 0x541   : > { %1527 = vmatprep.subr.bf16.mxu1 %v1883_v44 }
 0x544   : > { %1528 = vmatpush3.bf16.msra.mxu1 %v1662_v47 }
 0x545   : > { %1529 = vmatprep.subr.bf16.mxu1 %v1883_v44 }
 0x548   : > { %1530 = vmatpush3.bf16.msra.mxu1 %v1663_v48 }
 0x549   : > { %1531 = vmatprep.subr.bf16.mxu1 %v1883_v44 }
 0x54c   : > { %1532 = vmatpush3.bf16.msra.mxu1 %v1664_v49 }
 0x54d   : > { %1533 = vmatprep.subr.bf16.mxu1 %v1883_v44 }
 0x550   : > { %1534 = vmatpush3.bf16.msra.mxu1 %v1665_v50 }
 0x551   : > { %1535 = vmatprep.subr.bf16.mxu1 %v1883_v44 }
 0x554   : > { %1536 = vmatpush3.bf16.msra.mxu1 %v1666_v51 }
 0x5f7   : > { %v983_v18 = vpop.f32.mrf.mxu1 }
 0x5f8   : > { %v2303_v19 = vadd.f32 %v983_v18, %v2104_v0  ;;  %v1652_v0 = vld [vmem:[%s2425_s6 + $0x24] ss:$8 sps:$4 sm:$0xff]  }
 0x5f9   : > { %v1519_v20 = vpop.f32.mrf.mxu1  ;;  %1068 = vmatprep.subr.bf16.mxu0 %v1652_v0 }
 0x5fa   : > { %v990_v21 = vmul.f32 %v2303_v19, %v2303_v19  ;;  %1069 = vmatpush1.bf16.msra.mxu0 %v1650_v28 }
 0x5fb   : > { %v986_v22 = vpop.f32.mrf.mxu1  ;;  %1070 = vmatprep.subr.bf16.mxu0 %v1655_v29 }
 0x5fc   : > { %v991_v23 = vsel %vm515_vm0, %v990_v21, 0.0 }
 0x5fd   : > { %992 = vadd.xlane.f32.xlu0 %v991_v23  ;;  %v1520_v25 = vpop.f32.mrf.mxu1 }
 0x5fe   : > { %1071 = vmatpush1.bf16.msra.mxu0 %v1653_v31 }
 0x5ff   : > { %1072 = vmatprep.subr.bf16.mxu0 %v1658_v32 }
 0x602   : > { %1073 = vmatpush1.bf16.msra.mxu0 %v1656_v33 }
 0x686   : > { %v993_v34 = vpop.xlane.xlu0 %992 }
 0x687   : > { %v994_v35 = vmul.f32 0.015625, %v993_v34 }
 0x689   : > { %v995_v36 = vadd.f32 1e-05, %v994_v35 }
 0x68b   : > { %1673 = vrsqrt.f32 %v995_v36 }
 0x698   : > { %v1674_v37 = vpop.eup %1673 }
 0x699   : > { %v997_v39 = vmul.f32 %v1674_v37, %v2303_v19 }
 0x69b   : > { %v1005_v40 = vmul.f32 %v1413_v38, %v997_v39 }
 0x69d   : > { %v1006_v41 = vpack.c.bf16 %v1005_v40, %v1005_v40 }
 0x69f   : > { %1422 = vmatmul.mubr.msk.bf16.vlgmr.msra.gmra.mxu0 %vm515_vm0, %v1006_v41 }
 0x75f   : > { %v1092_v52 = vpop.f32.mrf.mxu0 }
 0x760   : > { %v1423_v24 = vmul.f32 -1.442695, %v1092_v52 }
 0x761   : > { %v1094_v30 = vpop.f32.mrf.mxu0 }
 0x762   : > { %1675 = vpow2.f32 %v1423_v24 }
 0x763   : > { %v1096_v53 = vpop.f32.mrf.mxu0 }
 0x765   : > { %v1097_v45 = vpop.f32.mrf.mxu0 }
 0x76f   : > { %v1676_v54 = vpop.eup %1675 }
 0x770   : > { %v1102_v55 = vadd.f32 1.0, %v1676_v54 }
 0x772   : > { %1677 = vrcp.f32 %v1102_v55 }
 0x77f   : > { %v1678_v56 = vpop.eup %1677 }
 0x780   : > { %v1105_v57 = vmul.f32 %v1678_v56, %v1092_v52 }
 0x782   : > { %v1106_v44 = vmul.f32 %v1105_v57, %v1094_v30 }
 0x784   : > { %v1107_v58 = vpack.c.bf16 %v1106_v44, %v1106_v44 }
 0x786   : > { %1538 = vmatmul.mubr.bf16.vlgmr.msra.gmra.mxu1 %v1107_v58 }
 0x846   : > { %v1206_v61 = vpop.f32.mrf.mxu1 }
 0x847   : > { %v1212_v59 = vadd.f32 %v1206_v61, %v2303_v19 }
 0x848   : > { %v1539_v60 = vpop.f32.mrf.mxu1 }
 0x849   : > { %1213 = vst.msk [vmem:[%s493_s25] sm:$0xff] %vm515_vm0, %v1212_v59 }
 0x84a   : > { %v1209_v62 = vpop.f32.mrf.mxu1 }
 0x84b   : > { %1806 = shalt.err (!%p1803_p13)
}
 0x84c   : > { %s1807_s19 = scalar_lea.hbm %s2375_s24, 128  ;;  %s1811_s30 = scalar_lea.hbm %s2431_s12, 256 }
 0x84d   : > { %p1808_p4 = scmp.ne.s32.totalorder %s2375_s24, %s1807_s19  ;;  %p1812_p11 = scmp.lt.s32.totalorder %s2375_s24, %s2431_s12 }
 0x84e   : > { %p1813_p7 = scmp.lt.s32.totalorder %s1811_s30, %s1807_s19 }
 0x84f   : > { %p1809_p8 = pnand %p1808_p4, %p2464_p5 }
 0x850   : > { %p1814_p12 = por %p1813_p7, %p1812_p11 }
 0x851   : > { %p1810_p6 = pneg %p1809_p8 }
 0x853   : > { %p1815_p0 = pnand %p1814_p12, %p1810_p6 }
 0x855   : > { %1818 = shalt.err (!%p1815_p0)
}
 0x856   : > { %1555 = dma.vmem_to_hbm [thread:$0]  (%p2464_p5), %s2377_s27, 128, %s2375_s24, %s1215_s0   ;;  %v1540_v63 = vpop.f32.mrf.mxu1 }
 0x857 PF: > { %s2465_s18 = sld [smem:[#allocation20_spill]]  ;;  %s1248_s25 = sand.u32 1, %s1855_s28  }
 0x858   : > { %p2467_p1 = scmp.ge.s32.totalorder %s1867_s14, 2  ;;  %s1249_s5 = scalar_lea.sflag [#allocation7], %s1248_s25 }
 0x85d   : > { %p2466_p10 = scmp.ne.s32.totalorder %s2465_s18, 0 }
 0x85f   : > { %p1572_p2 = pnand %p2467_p1, %p2466_p10 }
 0x861   : > { %p1573_p3 = pneg %p1572_p2 }
 0x863   : > { %1850 = dma.done.wait (%p1573_p3), %s1249_s5, 128  }
 0x864   : > { %1852 = vsyncadd (%p1573_p3), %s1249_s5, 4294967168  ;;  %s2468_s14 = sld [smem:[#allocation21_spill]]  ;;  %s2471_s28 = smov %s1859_s29 }
 0x865   : > { %s2469_s23 = sld [smem:[#allocation19_spill]] }
 0x866   : > { %s2470_s30 = sld [smem:[#allocation22_spill]] }
 0x86a   : > { %p33_p9 = scmp.ge.s32.totalorder %s2468_s14, 4  }
 0x86b   : > { %s2472_s29 = smov %s2469_s23 }
 0x86c   :  { %35 = sbr.rel (!%p33_p9) target bundleno = 15 (0xf), region = 139 }
 0x871   :  { %1262 = vsyncpa [#allocation6], 1 }
 0x872   :  { %1264 = vsyncpa [#allocation6 + $0x1], 1 }
 0x873   :  { %1265 = vsyncpa [#allocation9], 1 }
 0x874   :  { %1266 = vsyncpa [#allocation12], 1 }
 0x875   :  { %1267 = vsyncpa [#allocation7], 1 }
 0x876   :  { %1269 = vsyncpa [#allocation7 + $0x1], 1 }

</bundles_post_ra>
